<compile_context>
chip_gen: v6e
topology: v6e:2x2x1
jax: 0.10.0
libtpu: 0.0.40
codegen_flags: <defaults>
</compile_context>

<pallas_src>
import jax
import jax.numpy as jnp
from jax.experimental import pallas as pl
from jax.experimental.pallas import tpu as pltpu

NEG_SLOPE = 0.01                 # torch.nn.LeakyReLU() default
LANES = 128
_VMEM_LIMIT = 32 * 1024 * 1024   # explicit: v5e scoped default is only 16 MiB
_TAIL_BLOCK_ELEMS = 64 * 1024    # (1, 64K) blocks for the ragged fallback path


def _leaky_relu_kernel(x_ref, o_ref):
    x = x_ref[...]
    # max(x, slope*x) == leaky_relu(x) for slope in (0,1); 2 VALU ops per vreg.
    o_ref[...] = jnp.maximum(x, x * NEG_SLOPE)


def _round_up(a: int, b: int) -> int:
    return ((a + b - 1) // b) * b


def _num_tensorcores_per_chip() -> int:
    """Best-effort detection of TensorCores per chip (v7x has 2)."""
    try:
        d = jax.devices()[0]
        kind = str(getattr(d, "device_kind", "")).lower()
        if "v7" in kind:
            return 2
        nc = getattr(d, "num_cores", None)
        if isinstance(nc, int) and nc > 1:
            return nc
    except Exception:
        pass
    return 1


def _compiler_params():
    return pltpu.CompilerParams(
        dimension_semantics=("parallel",),
        vmem_limit_bytes=_VMEM_LIMIT,
    )


def _leaky_relu_2d(x2d: jax.Array, *, block_rows: int, sub: int) -> jax.Array:
    """Fast path: lane-dense (rows, 128) slab, big contiguous blocks."""
    rows, lanes = x2d.shape
    cores = _num_tensorcores_per_chip()

    tb = max(sub, min(block_rows, _round_up(rows, sub)))
    tb = _round_up(tb, sub)
    if cores > 1 and rows > sub:
        # Balance work across TensorCores: grid count a multiple of `cores`.
        g = pl.cdiv(rows, tb)
        g_bal = max(cores, _round_up(g, cores))
        tb = max(sub, _round_up(pl.cdiv(rows, g_bal), sub))

    grid = (pl.cdiv(rows, tb),)

    return pl.pallas_call(
        _leaky_relu_kernel,
        out_shape=jax.ShapeDtypeStruct((rows, lanes), x2d.dtype),
        grid_spec=pltpu.PrefetchScalarGridSpec(
            num_scalar_prefetch=0,
            grid=grid,
            in_specs=[pl.BlockSpec((tb, lanes), lambda i: (i, 0))],
            out_specs=pl.BlockSpec((tb, lanes), lambda i: (i, 0)),
        ),
        compiler_params=_compiler_params(),
    )(x2d)


def _leaky_relu_lanes(x_flat: jax.Array) -> jax.Array:
    """Pad-free fallback for n % 128 != 0: (1, n) layout, lane-tiled blocks."""
    n = x_flat.shape[0]
    x2d = x_flat.reshape(1, n)  # free reshape, no HBM copy

    if n <= _TAIL_BLOCK_ELEMS:
        blk = n                 # full-array block: bypasses the %128 rule
    else:
        blk = _TAIL_BLOCK_ELEMS  # multiple of 128; ragged tail is masked

    grid = (pl.cdiv(n, blk),)

    out2d = pl.pallas_call(
        _leaky_relu_kernel,
        out_shape=jax.ShapeDtypeStruct((1, n), x2d.dtype),
        grid_spec=pltpu.PrefetchScalarGridSpec(
            num_scalar_prefetch=0,
            grid=grid,
            in_specs=[pl.BlockSpec((1, blk), lambda i: (0, i))],
            out_specs=pl.BlockSpec((1, blk), lambda i: (0, i)),
        ),
        compiler_params=_compiler_params(),
    )(x2d)
    return out2d.reshape(n)


def leaky_relu_pallas(x: jax.Array, *, block_rows: int = 8192) -> jax.Array:
    """Elementwise LeakyReLU (slope=0.01) over an arbitrary-shape array."""
    orig_shape = x.shape
    n = x.size
    if n == 0:
        return x

    # sublane rounding per dtype packing (f32 -> 8, bf16 -> 16, int8 -> 32)
    itemsize = jnp.dtype(x.dtype).itemsize
    sub = 8 * max(1, 4 // max(1, itemsize))

    if n % LANES == 0:
        # Free reshape to a lane-dense (rows, 128) slab; ragged sublane tail
        # (rows not a multiple of `sub`) is handled by grid masking.
        rows = n // LANES
        out2d = _leaky_relu_2d(x.reshape(rows, LANES),
                               block_rows=block_rows, sub=sub)
        return out2d.reshape(orig_shape)

    # Pad-free ragged path: no jnp.pad, no output slice.
    out_flat = _leaky_relu_lanes(x.reshape(-1))
    return out_flat.reshape(orig_shape)


if __name__ == "__main__":
    key = jax.random.PRNGKey(0)

    # rank-4 f32 input consistent with LeakyReLU_F32_R4 (128-divisible path)
    x = jax.random.normal(key, (2, 4, 16, 16), dtype=jnp.float32)
    y = leaky_relu_pallas(x)
    jax.block_until_ready(y)
    y_ref = jnp.where(x >= 0, x, x * NEG_SLOPE)
    assert y.shape == x.shape and y.dtype == x.dtype
    assert jnp.array_equal(y, y_ref), "mismatch vs reference (fast path)"

    # awkward rank-4 shape to exercise the pad-free ragged fallback path
    x2 = jax.random.normal(jax.random.PRNGKey(1), (2, 3, 5, 7), dtype=jnp.float32)
    y2 = leaky_relu_pallas(x2)
    jax.block_until_ready(y2)
    y2_ref = jnp.where(x2 >= 0, x2, x2 * NEG_SLOPE)
    assert y2.shape == x2.shape and y2.dtype == x2.dtype
    assert jnp.array_equal(y2, y2_ref), "mismatch vs reference (ragged path)"

    # larger 128-divisible (but not 1024-divisible) shape: relaxed pad-free path
    x3 = jax.random.normal(jax.random.PRNGKey(2), (2, 4, 20, 16), dtype=jnp.float32)
    y3 = leaky_relu_pallas(x3)
    jax.block_until_ready(y3)
    y3_ref = jnp.where(x3 >= 0, x3, x3 * NEG_SLOPE)
    assert jnp.array_equal(y3, y3_ref), "mismatch vs reference (n%128==0 path)"

    print("KERNEL_OK")
</pallas_src>

<mosaic_0001>
module attributes {stable_mosaic.version = 11 : i64} {
  func.func @_leaky_relu_kernel(%arg0: i32, %arg1: memref<16x128xf32, #tpu.memory_space<vmem>>, %arg2: memref<16x128xf32, #tpu.memory_space<vmem>>) attributes {dimension_semantics = [#tpu.dimension_semantics<parallel>], iteration_bounds = array<i64: 1>, scalar_prefetch = 0 : i64, scratch_operands = 0 : i64, tpu.core_type = #tpu.core_type<tc>, window_params = [{transform_indices = @transform_0, window_bounds = array<i64: 16, 128>}, {transform_indices = @transform_1, window_bounds = array<i64: 16, 128>}]} {
    %c0 = arith.constant 0 : index
    %c0_0 = arith.constant 0 : index
    %0 = vector.load %arg1[%c0, %c0_0] : memref<16x128xf32, #tpu.memory_space<vmem>>, vector<16x128xf32>
    %cst = arith.constant 0.00999999977 : f32
    %1 = vector.broadcast %cst : f32 to vector<16x128xf32>
    %2 = arith.mulf %0, %1 : vector<16x128xf32>
    %3 = arith.maximumf %0, %2 : vector<16x128xf32>
    %c0_1 = arith.constant 0 : index
    %c0_2 = arith.constant 0 : index
    %4 = vector.load %arg2[%c0_1, %c0_2] : memref<16x128xf32, #tpu.memory_space<vmem>>, vector<16x128xf32>
    tpu.vector_store %arg2[%c0_1, %c0_2], %3 {strides = array<i32>} : memref<16x128xf32, #tpu.memory_space<vmem>>, vector<16x128xf32>,
    return
  }
  func.func @transform_0(%arg0: i32) -> (i32, i32) {
    %c0_i32 = arith.constant 0 : i32
    %c0_i32_0 = arith.constant 0 : i32
    return %arg0, %c0_i32 : i32, i32
  }
  func.func @transform_1(%arg0: i32) -> (i32, i32) {
    %c0_i32 = arith.constant 0 : i32
    %c0_i32_0 = arith.constant 0 : i32
    return %arg0, %c0_i32 : i32, i32
  }
}

</mosaic_0001>

<bundles_post_ra>
// kernel: tpu_custom_call.1
= control target key start
LH: loop header
LB: loop body
LE: loop exit
PB: predicated region body
PF: predicated region fallthrough
CT: control target
= control target key end

     0   :  { %6 = vsyncpa [#allocation3], 0  ;;  %s116_s0 = inlined_call_operand.hbm [shape: f32[16,128], index: 0, kind: input, shape index: {}]   ;;  %s117_s1 = inlined_call_operand.hbm [shape: f32[16,128], index: 1, kind: output, shape index: {}]  }
   0x1   :  { %7 = vsyncpa [#allocation4], 0  ;;  %s96_s6 = smov [#allocation2]  }
   0x2   :  { %s13_s7 = sshll.u32 %s96_s6, 4  ;;  %s14_s7 = int_to_ptr.vmem [resolvable:$true] %s13_s7 }
   0x3   :  { %s60_s8 = scalar_lea.vmem %s14_s7, 256  ;;  %p65_p1 = scmp.lt.s32.totalorder %s14_s7, %s14_s7 }
   0x4   :  { %p61_p0 = scmp.ne.s32.totalorder %s14_s7, %s60_s8  ;;  %p66_p2 = scmp.lt.s32.totalorder %s60_s8, %s60_s8 }
   0x6   :  { %p67_p3 = por %p66_p2, %p65_p1 }
   0x8   :  { %p68_p4 = pnand %p67_p3, %p61_p0 }
   0xa   :  { %71 = shalt.err (!%p68_p4)
}
   0xb   :  { %s97_s9 = smov 128   ;;  %s98_s10 = smov 8  }
   0xc   :  { %19 = dma.hbm_to_vmem [thread:$0]  %s116_s0, 256, %s14_s7, [#allocation3], %s97_s9, %s97_s9, %s98_s10  }
   0xd   :  { %92 = dma.done.wait [#allocation3], 256  }
   0xe   :  { %93 = vsyncadd [#allocation3], 4294967040  ;;  %v23_v0 = vld [vmem:[#allocation2] sm:$0xff]  ;;  %v24_v1 = vld [vmem:[#allocation2 + $0x8] sm:$0xff]  ;;  %s99_s13 = smov [#allocation5]  }
   0xf   :  { %s36_s14 = sshll.u32 %s99_s13, 4  ;;  %v25_v2 = vmul.f32 0.01, %v23_v0  ;;  %v26_v3 = vmul.f32 0.01, %v24_v1  ;;  %s37_s14 = int_to_ptr.vmem [resolvable:$true] %s36_s14 }
  0x10   :  { %s72_s15 = scalar_lea.vmem %s37_s14, 256  ;;  %p77_p6 = scmp.lt.s32.totalorder %s37_s14, %s37_s14 }
  0x11   :  { %v27_v4 = vmax.f32 %v23_v0, %v25_v2  ;;  %v28_v5 = vmax.f32 %v24_v1, %v26_v3  ;;  %p73_p5 = scmp.ne.s32.totalorder %s37_s14, %s72_s15  ;;  %p78_p7 = scmp.lt.s32.totalorder %s72_s15, %s72_s15 }
  0x13   :  { %29 = vst [vmem:[#allocation5] sm:$0xff] %v27_v4  ;;  %30 = vst [vmem:[#allocation5 + $0x8] sm:$0xff] %v28_v5  ;;  %p79_p8 = por %p78_p7, %p77_p6 }
  0x15   :  { %p80_p9 = pnand %p79_p8, %p73_p5 }
  0x17   :  { %83 = shalt.err (!%p80_p9)
}
  0x18   :  { %42 = dma.vmem_to_hbm [thread:$0]  %s37_s14, 256, %s117_s1, [#allocation4], %s97_s9, %s97_s9, %s98_s10  }
  0x19   :  { %94 = dma.done.wait [#allocation4], 256  }
  0x1a   :  { %95 = vsyncadd [#allocation4], 4294967040 }
  0x1b   :  { %46 = vsyncpa [#allocation3], 1 }
  0x1c   :  { %47 = vsyncpa [#allocation4], 1 }

</bundles_post_ra>
